<compile_context>
chip_gen: v5e
topology: v5e:2x2
jax: 0.10.0
libtpu: 0.0.40
codegen_flags: <defaults>
</compile_context>

<pallas_src>
import functools

import jax
import jax.numpy as jnp
from jax.experimental import pallas as pl
from jax.experimental.pallas import tpu as pltpu

DIM = 4
NUM_LAYER = 8
LANES = 128
PACK = LANES // DIM  # 32 batch rows packed per 128-lane row


def _round_up(n, m):
    return ((n + m - 1) // m) * m


def _cdiv(n, m):
    return (n + m - 1) // m


def mlp_kernel(x_ref, w_ref, b_ref, o_ref):
    # x_ref: (TILE_R, 128) -- 32 batch rows of width 4 packed along lanes
    # w_ref: (128, 128)    -- block-diagonal I_32 (x) W_total^T, f32, VMEM-resident
    # b_ref: (1, 128)      -- folded bias tiled 32x, f32, VMEM-resident
    o_ref[...] = (
        jnp.dot(x_ref[...], w_ref[...], preferred_element_type=jnp.float32)
        + b_ref[...]
    ).astype(o_ref.dtype)


@functools.partial(jax.jit, static_argnames=("tile_r",))
def mlp_forward(x, w, b, *, tile_r=8192):
    """x: (B, DIM); w: (NUM_LAYER, DIM, DIM) [out,in]; b: (NUM_LAYER, DIM)."""
    B = x.shape[0]

    # Fold the 8 activation-free Linear layers into one affine map (tiny 4x4
    # work, done once XLA-side):  y = x @ W_total^T + b_total.
    w_total = w[0].astype(jnp.float32)
    b_total = b[0].astype(jnp.float32)
    for l in range(1, NUM_LAYER):
        wl = w[l].astype(jnp.float32)
        w_total = jnp.dot(wl, w_total)
        b_total = jnp.dot(wl, b_total) + b[l].astype(jnp.float32)

    # Block-diagonal (Kronecker) weight so the kernel consumes x in its native
    # row-major layout via a free reshape (B,4) -> (R,128).
    w128 = jnp.kron(jnp.eye(PACK, dtype=jnp.float32), w_total.T)  # (128, 128)
    b128 = jnp.tile(b_total, PACK).reshape(1, LANES)              # (1, 128)

    # Pad only the batch remainder so B*DIM forms whole (tile_r, 128) blocks.
    Bp0 = _round_up(max(B, 1), PACK)
    R = (Bp0 * DIM) // LANES
    if R <= 8:
        tr = R  # single block, block_shape == full array dims (allowed)
    else:
        # >= 2 tiles whenever possible (v7x megacore), rows a multiple of 8.
        tr = max(8, min(int(tile_r), _round_up(_cdiv(R, 2), 8)))
    grid = _cdiv(R, tr)
    Rp = grid * tr
    Bp = (Rp * LANES) // DIM

    x_pad = jnp.pad(x, ((0, Bp - B), (0, 0)))
    x2 = x_pad.reshape(Rp, LANES)  # contiguous reshape: no data movement

    itemsize = jnp.dtype(x.dtype).itemsize
    bytes_io = 2 * Rp * LANES * itemsize + (LANES * LANES + LANES) * 4

    y2 = pl.pallas_call(
        mlp_kernel,
        out_shape=jax.ShapeDtypeStruct((Rp, LANES), x.dtype),
        grid_spec=pltpu.PrefetchScalarGridSpec(
            num_scalar_prefetch=0,
            grid=(grid,),
            in_specs=[
                pl.BlockSpec((tr, LANES), lambda i: (i, 0)),      # x tile (pipelined)
                pl.BlockSpec((LANES, LANES), lambda i: (0, 0)),   # block-diag W, resident
                pl.BlockSpec((1, LANES), lambda i: (0, 0)),       # bias, resident
            ],
            out_specs=pl.BlockSpec((tr, LANES), lambda i: (i, 0)),
        ),
        compiler_params=pltpu.CompilerParams(
            dimension_semantics=("parallel",),       # shard batch tiles across TCs
            vmem_limit_bytes=48 * 1024 * 1024,       # <= 64 MiB physical on v7x
        ),
        cost_estimate=pl.CostEstimate(
            flops=2 * Rp * LANES * LANES,
            transcendentals=0,
            bytes_accessed=bytes_io,
        ),
    )(x2, w128, b128)

    return y2.reshape(Bp, DIM)[:B]


def init_params(key):
    # Deterministic init mimicking nn.Linear's default uniform(-1/sqrt(in), 1/sqrt(in)).
    kw, kb = jax.random.split(key)
    bound = 1.0 / jnp.sqrt(jnp.float32(DIM))
    w = jax.random.uniform(kw, (NUM_LAYER, DIM, DIM), jnp.float32, -bound, bound)
    b = jax.random.uniform(kb, (NUM_LAYER, DIM), jnp.float32, -bound, bound)
    return w, b


def reference_forward(x, w, b):
    # Layer-by-layer reference, identical to the PyTorch module.
    h = x.astype(jnp.float32)
    for l in range(NUM_LAYER):
        h = h @ w[l].T + b[l]
    return h.astype(x.dtype)


if __name__ == "__main__":
    key = jax.random.PRNGKey(0)
    kx, kp = jax.random.split(key)
    w, b = init_params(kp)

    # Small test (single block, block_shape == full array dims path).
    B = 8
    x = jax.random.normal(kx, (B, DIM), jnp.float32)
    out = jax.block_until_ready(mlp_forward(x, w, b))
    ref = reference_forward(x, w, b)
    assert out.shape == (B, DIM)
    assert jnp.allclose(out, ref, atol=1e-4, rtol=1e-4)

    # Multi-tile test exercising the batch grid + remainder-padding path.
    B2 = 300
    x2 = jax.random.normal(jax.random.PRNGKey(1), (B2, DIM), jnp.float32)
    out2 = jax.block_until_ready(mlp_forward(x2, w, b, tile_r=8))
    ref2 = reference_forward(x2, w, b)
    assert out2.shape == (B2, DIM)
    assert jnp.allclose(out2, ref2, atol=1e-4, rtol=1e-4)

    print("KERNEL_OK")
</pallas_src>

<mosaic_0001>
module attributes {stable_mosaic.version = 11 : i64} {
  func.func @mlp_kernel(%arg0: i32, %arg1: memref<1x128xf32, #tpu.memory_space<vmem>>, %arg2: memref<128x128xf32, #tpu.memory_space<vmem>>, %arg3: memref<1x128xf32, #tpu.memory_space<vmem>>, %arg4: memref<1x128xf32, #tpu.memory_space<vmem>>) attributes {dimension_semantics = [#tpu.dimension_semantics<parallel>], iteration_bounds = array<i64: 1>, scalar_prefetch = 0 : i64, scratch_operands = 0 : i64, tpu.core_type = #tpu.core_type<tc>, window_params = [{transform_indices = @transform_0, window_bounds = array<i64: 1, 128>}, {pipeline_mode = #tpu.pipeline_mode<synchronous>, transform_indices = @transform_1, window_bounds = array<i64: 128, 128>}, {pipeline_mode = #tpu.pipeline_mode<synchronous>, transform_indices = @transform_2, window_bounds = array<i64: 1, 128>}, {transform_indices = @transform_3, window_bounds = array<i64: 1, 128>}]} {
    %c0 = arith.constant 0 : index
    %c0_0 = arith.constant 0 : index
    %0 = vector.load %arg1[%c0, %c0_0] : memref<1x128xf32, #tpu.memory_space<vmem>>, vector<1x128xf32>
    %c0_1 = arith.constant 0 : index
    %c0_2 = arith.constant 0 : index
    %1 = vector.load %arg2[%c0_1, %c0_2] : memref<128x128xf32, #tpu.memory_space<vmem>>, vector<128x128xf32>
    %cst = arith.constant dense<0.000000e+00> : vector<1x128xf32>
    %2 = tpu.matmul %0, %1, %cst {dimension_numbers = #tpu.dot_dimension_numbers<[1], [0], [0], [1], [0, 0, 1, 1], [], []>} : vector<1x128xf32>, vector<128x128xf32>, vector<1x128xf32> -> vector<1x128xf32>
    %c0_3 = arith.constant 0 : index
    %c0_4 = arith.constant 0 : index
    %3 = vector.load %arg3[%c0_3, %c0_4] : memref<1x128xf32, #tpu.memory_space<vmem>>, vector<1x128xf32>
    %4 = arith.addf %2, %3 : vector<1x128xf32>
    %c0_5 = arith.constant 0 : index
    %c0_6 = arith.constant 0 : index
    %5 = vector.load %arg4[%c0_5, %c0_6] : memref<1x128xf32, #tpu.memory_space<vmem>>, vector<1x128xf32>
    tpu.vector_store %arg4[%c0_5, %c0_6], %4 {strides = array<i32>} : memref<1x128xf32, #tpu.memory_space<vmem>>, vector<1x128xf32>,
    return
  }
  func.func @transform_0(%arg0: i32) -> (i32, i32) {
    %c0_i32 = arith.constant 0 : i32
    %c0_i32_0 = arith.constant 0 : i32
    return %arg0, %c0_i32 : i32, i32
  }
  func.func @transform_1(%arg0: i32) -> (i32, i32) {
    %c0_i32 = arith.constant 0 : i32
    %c0_i32_0 = arith.constant 0 : i32
    %c0_i32_1 = arith.constant 0 : i32
    return %c0_i32, %c0_i32_0 : i32, i32
  }
  func.func @transform_2(%arg0: i32) -> (i32, i32) {
    %c0_i32 = arith.constant 0 : i32
    %c0_i32_0 = arith.constant 0 : i32
    %c0_i32_1 = arith.constant 0 : i32
    return %c0_i32, %c0_i32_0 : i32, i32
  }
  func.func @transform_3(%arg0: i32) -> (i32, i32) {
    %c0_i32 = arith.constant 0 : i32
    %c0_i32_0 = arith.constant 0 : i32
    return %arg0, %c0_i32 : i32, i32
  }
}

</mosaic_0001>

<bundles_post_ra>
// kernel: tile.8
= control target key start
LH: loop header
LB: loop body
LE: loop exit
PB: predicated region body
PF: predicated region fallthrough
CT: control target
= control target key end

     0   :  { %s40_s0 = inlined_call_operand.vmem [shape: f32[4], index: 0, kind: input, shape index: {}]   ;;  %s41_s1 = inlined_call_operand.vmem [shape: f32[32,4], index: 1, kind: output, shape index: {}]  }
   0x1   :  { %v4_v0 = vld [vmem:[%s40_s0] ss:$0 sm:$0xff] }
   0x2   :  { %5 = vst [vmem:[%s41_s1] sm:$0xff] %v4_v0 }
   0x3   :  { %12 = vst [vmem:[%s41_s1 + $0x8] sm:$0xff] %v4_v0 }
   0x4   :  { %13 = vst [vmem:[%s41_s1 + $0x10] sm:$0xff] %v4_v0 }
   0x5   :  { %14 = vst [vmem:[%s41_s1 + $0x18] sm:$0xff] %v4_v0 }

// kernel: mlp_forward.1
= control target key start
LH: loop header
LB: loop body
LE: loop exit
PB: predicated region body
PF: predicated region fallthrough
CT: control target
= control target key end

     0   :  { %s134_s1 = inlined_call_operand.vmem [shape: f32[128,128], index: 1, kind: input, shape index: {}]   ;;  %s135_s0 = inlined_call_operand.vmem [shape: f32[1,128], index: 0, kind: input, shape index: {}]   ;;  %s136_s2 = inlined_call_operand.vmem [shape: f32[1,128], index: 2, kind: input, shape index: {}]   ;;  %s137_s3 = inlined_call_operand.vmem [shape: f32[1,128], index: 3, kind: output, shape index: {}]  }
   0x1   :  { %v30_v0 = vld [vmem:[%s134_s1 + $0x78] sm:$0xff]  ;;  %v29_v1 = vld [vmem:[%s134_s1 + $0x70] sm:$0xff]  ;;  %v28_v2 = vld [vmem:[%s134_s1 + $0x68] sm:$0xff] }
   0x2   :  { %32 = vmatpush.msra.mxu0 %v30_v0  ;;  %v27_v3 = vld [vmem:[%s134_s1 + $0x60] sm:$0xff]  ;;  %v26_v4 = vld [vmem:[%s134_s1 + $0x58] sm:$0xff]  ;;  %v25_v5 = vld [vmem:[%s134_s1 + $0x50] sm:$0xff] }
   0x3   :  { %v24_v6 = vld [vmem:[%s134_s1 + $0x48] sm:$0xff]  ;;  %v23_v7 = vld [vmem:[%s134_s1 + $0x40] sm:$0xff]  ;;  %v22_v8 = vld [vmem:[%s134_s1 + $0x38] sm:$0xff] }
   0x4   :  { %33 = vmatpush.msra.mxu0 %v29_v1  ;;  %v21_v9 = vld [vmem:[%s134_s1 + $0x30] sm:$0xff]  ;;  %v20_v10 = vld [vmem:[%s134_s1 + $0x28] sm:$0xff]  ;;  %v19_v11 = vld [vmem:[%s134_s1 + $0x20] sm:$0xff] }
   0x5   :  { %v18_v12 = vld [vmem:[%s134_s1 + $0x18] sm:$0xff]  ;;  %v17_v13 = vld [vmem:[%s134_s1 + $0x10] sm:$0xff]  ;;  %v16_v14 = vld [vmem:[%s134_s1 + $0x8] sm:$0xff] }
   0x6   :  { %34 = vmatpush.msra.mxu0 %v28_v2  ;;  %v15_v15 = vld [vmem:[%s134_s1] sm:$0xff] }
   0x7   :  { %v14_v16 = vld [vmem:[%s135_s0] sm:$0x1] }
   0x8   :  { %35 = vmatpush.msra.mxu0 %v27_v3  ;;  %v31_v17 = vld [vmem:[%s136_s2] sm:$0x1] }
   0xa   :  { %36 = vmatpush.msra.mxu0 %v26_v4 }
   0xc   :  { %37 = vmatpush.msra.mxu0 %v25_v5 }
   0xe   :  { %38 = vmatpush.msra.mxu0 %v24_v6 }
  0x10   :  { %39 = vmatpush.msra.mxu0 %v23_v7 }
  0x12   :  { %40 = vmatpush.msra.mxu0 %v22_v8 }
  0x14   :  { %41 = vmatpush.msra.mxu0 %v21_v9 }
  0x16   :  { %42 = vmatpush.msra.mxu0 %v20_v10 }
  0x18   :  { %43 = vmatpush.msra.mxu0 %v19_v11 }
  0x1a   :  { %44 = vmatpush.msra.mxu0 %v18_v12 }
  0x1c   :  { %45 = vmatpush.msra.mxu0 %v17_v13 }
  0x1e   :  { %46 = vmatpush.msra.mxu0 %v16_v14 }
  0x20   :  { %47 = vmatpush.msra.mxu0 %v15_v15 }
  0x21   :  { %48 = vmatmul.f32.vlgmr.msra.gmra.mxu0 %v14_v16 }
  0x9e   :  { %v49_v18 = vpop.f32.mrf.mxu0 }
  0x9f   :  { %v50_v19 = vadd.f32 %v49_v18, %v31_v17 }
  0xa1   :  { %52 = vst [vmem:[%s137_s3] sm:$0x1] %v50_v19 }

</bundles_post_ra>
